<compile_context>
chip_gen: v7x
topology: tpu7x:2x2x1
jax: 0.10.0
libtpu: 0.0.40
codegen_flags: <defaults>
</compile_context>

<pallas_src>
import jax
import jax.numpy as jnp
from jax.experimental import pallas as pl
from jax.experimental.pallas import tpu as pltpu

FEATURE_DIM = 128
CONV_OUT_CH = 16
KSIZE = 3
SPATIAL_IN = 10                                      # ConvHead hard-codes size_linear_unit(10)
SPATIAL_OUT = SPATIAL_IN - KSIZE + 1                 # 8
NUM_LINEAR = SPATIAL_OUT * SPATIAL_OUT * CONV_OUT_CH  # 1024
WIDE = SPATIAL_OUT * CONV_OUT_CH                     # 128 (lane-dense conv output width)
MXU_DTYPE = jnp.bfloat16                             # MXU operand dtype (f32 accumulation)


def _round_up(a, b):
    return (a + b - 1) // b * b


# ------------------------------ Pallas kernel ------------------------------

def _conv_head_kernel(p_ref, wbig_ref, bconv_ref, wfc_ref, bfc_ref, o_ref):
    """Fused ConvHead for one batch tile.

    p_ref    : (8, tile, 8*C*9)  bf16  im2col patches, grouped by conv output row h
    wbig_ref : (8*C*9, 128)      bf16  block-diagonal conv weight (8 copies of (C*9,16))
    bconv_ref: (1, 128)          f32   conv bias tiled 8x along lanes
    wfc_ref  : (8, 128, 128)     bf16  fc weight, rows permuted to (h, w*16+c) order
    bfc_ref  : (1, 128)          f32   fc bias
    o_ref    : (tile, 128)       f32   relu(fc_hidden(flatten(relu(conv(x)))))
    """
    tile = o_ref.shape[0]
    acc = jnp.zeros((tile, FEATURE_DIM), jnp.float32)
    for h in range(SPATIAL_OUT):                     # static unroll (8 iterations)
        # conv output row h: relu(patches_h @ Wbig + b)  -> (tile, 128), lane dense
        conv_h = jnp.dot(p_ref[h], wbig_ref[...], preferred_element_type=jnp.float32)
        conv_h = jnp.maximum(conv_h + bconv_ref[...], 0.0)
        # partial fc_hidden contribution of row h: (tile,128) @ (128,128), f32 accumulate
        acc = acc + jnp.dot(conv_h.astype(wfc_ref.dtype), wfc_ref[h],
                            preferred_element_type=jnp.float32)
    o_ref[...] = jnp.maximum(acc + bfc_ref[...], 0.0)


# ----------------------------- parameter init ------------------------------

def _uniform(key, shape, fan_in):
    bound = 1.0 / float(fan_in) ** 0.5
    return jax.random.uniform(key, shape, jnp.float32, -bound, bound)


def init_params(key, in_channels):
    """PyTorch-style (uniform +-1/sqrt(fan_in)) init of conv + fc_hidden weights."""
    ks = jax.random.split(key, 4)
    ck = in_channels * KSIZE * KSIZE
    return {
        "conv_w": _uniform(ks[0], (CONV_OUT_CH, in_channels, KSIZE, KSIZE), ck),
        "conv_b": _uniform(ks[1], (CONV_OUT_CH,), ck),
        "fc_w": _uniform(ks[2], (FEATURE_DIM, NUM_LINEAR), NUM_LINear := NUM_LINEAR),
        "fc_b": _uniform(ks[3], (FEATURE_DIM,), NUM_LINEAR),
    }


def pack_params(params):
    """Pack weights into the kernel-ready layout (done once, outside the hot path)."""
    out_ch, c, _, _ = params["conv_w"].shape
    ck = c * KSIZE * KSIZE
    # (C*9, 16) conv matmul weight
    wc_mat = params["conv_w"].reshape(out_ch, ck).T
    # Block-diagonal (8*C*9, 128): block w maps patch-cols [w*Ck,(w+1)*Ck) -> lanes [w*16,(w+1)*16)
    eye = jnp.eye(SPATIAL_OUT, dtype=wc_mat.dtype)
    w_big = (eye[:, None, :, None] * wc_mat[None, :, None, :]).reshape(
        SPATIAL_OUT * ck, WIDE)
    b_conv_wide = jnp.tile(params["conv_b"], SPATIAL_OUT).reshape(1, WIDE)
    # Fold the PyTorch NCHW flatten order (j = c*64 + h*8 + w) into the fc weight:
    # w_fc3[h, w*16+c, f] = fc_w[f, c*64 + h*8 + w]
    w_fc3 = params["fc_w"].reshape(FEATURE_DIM, CONV_OUT_CH, SPATIAL_OUT, SPATIAL_OUT)
    w_fc3 = w_fc3.transpose(2, 3, 1, 0).reshape(SPATIAL_OUT, WIDE, FEATURE_DIM)
    return {
        "w_big": w_big.astype(MXU_DTYPE),
        "b_conv_wide": b_conv_wide.astype(jnp.float32),
        "w_fc3": w_fc3.astype(MXU_DTYPE),
        "b_fc": params["fc_b"].reshape(1, FEATURE_DIM).astype(jnp.float32),
    }


# ----------------------------- forward (wrapper) ----------------------------

def conv_head_forward(packed, x, *, batch_tile=256):
    """ConvHead.forward: returns relu(fc_hidden(flatten(relu(conv(x))))) of shape (N, 128)."""
    n, c = x.shape[0], x.shape[1]
    ck = c * KSIZE * KSIZE
    x = x.astype(jnp.float32)

    # --- glue: im2col, laid out as (h, n, w*Ck + k) with k = ci*9 + kh*3 + kw ---
    cols = [x[:, :, kh:kh + SPATIAL_OUT, kw:kw + SPATIAL_OUT]
            for kh in range(KSIZE) for kw in range(KSIZE)]      # each (N, C, 8, 8)
    p = jnp.stack(cols, axis=2)                                 # (N, C, 9, 8, 8)
    p = p.transpose(3, 0, 4, 1, 2)                              # (8, N, 8, C, 9)
    patches = p.reshape(SPATIAL_OUT, n, SPATIAL_OUT * ck).astype(MXU_DTYPE)

    # --- batch tiling (8-aligned tiles, padded batch) ---
    tile = min(batch_tile, _round_up(n, 8))
    n_pad = _round_up(n, tile)
    if n_pad != n:
        patches = jnp.pad(patches, ((0, 0), (0, n_pad - n), (0, 0)))

    phi = pl.pallas_call(
        _conv_head_kernel,
        out_shape=jax.ShapeDtypeStruct((n_pad, FEATURE_DIM), jnp.float32),
        grid=(n_pad // tile,),
        in_specs=[
            pl.BlockSpec((SPATIAL_OUT, tile, SPATIAL_OUT * ck), lambda i: (0, i, 0)),
            pl.BlockSpec((SPATIAL_OUT * ck, WIDE), lambda i: (0, 0)),
            pl.BlockSpec((1, WIDE), lambda i: (0, 0)),
            pl.BlockSpec((SPATIAL_OUT, WIDE, FEATURE_DIM), lambda i: (0, 0, 0)),
            pl.BlockSpec((1, FEATURE_DIM), lambda i: (0, 0)),
        ],
        out_specs=pl.BlockSpec((tile, FEATURE_DIM), lambda i: (i, 0)),
        compiler_params=pltpu.CompilerParams(dimension_semantics=("parallel",)),
    )(patches, packed["w_big"], packed["b_conv_wide"], packed["w_fc3"], packed["b_fc"])
    return phi[:n]


# ----------------------------- pure-JAX reference ---------------------------

def conv_head_forward_ref(params, x):
    conv = jax.lax.conv_general_dilated(
        x.astype(jnp.float32), params["conv_w"], (1, 1), "VALID",
        dimension_numbers=("NCHW", "OIHW", "NCHW"))
    a = jax.nn.relu(conv + params["conv_b"][None, :, None, None])
    flat = a.reshape(x.shape[0], -1)                      # PyTorch NCHW flatten order
    return jax.nn.relu(flat @ params["fc_w"].T + params["fc_b"][None, :])


# ---------------------------------- main ------------------------------------

if __name__ == "__main__":
    key = jax.random.PRNGKey(0)
    k_param, k_x = jax.random.split(key)

    in_channels = 4
    batch = 2

    params = init_params(k_param, in_channels)
    packed = pack_params(params)
    x = jax.random.normal(k_x, (batch, in_channels, SPATIAL_IN, SPATIAL_IN), jnp.float32)

    fwd = jax.jit(conv_head_forward)
    phi = jax.block_until_ready(fwd(packed, x))
    phi_ref = jax.block_until_ready(conv_head_forward_ref(params, x))

    assert phi.shape == (batch, FEATURE_DIM), phi.shape
    # bf16 MXU operands with f32 accumulation -> relaxed tolerance vs the f32 reference.
    assert jnp.allclose(phi, phi_ref, rtol=3e-2, atol=3e-2), (
        float(jnp.max(jnp.abs(phi - phi_ref))))
    print("KERNEL_OK")
</pallas_src>

<mosaic_0001>
module attributes {stable_mosaic.version = 11 : i64} {
  func.func @_conv_head_kernel(%arg0: i32, %arg1: memref<8x8x288xbf16, #tpu.memory_space<vmem>>, %arg2: memref<288x128xbf16, #tpu.memory_space<vmem>>, %arg3: memref<1x128xf32, #tpu.memory_space<vmem>>, %arg4: memref<8x128x128xbf16, #tpu.memory_space<vmem>>, %arg5: memref<1x128xf32, #tpu.memory_space<vmem>>, %arg6: memref<8x128xf32, #tpu.memory_space<vmem>>) attributes {dimension_semantics = [#tpu.dimension_semantics<parallel>], iteration_bounds = array<i64: 1>, scalar_prefetch = 0 : i64, scratch_operands = 0 : i64, tpu.core_type = #tpu.core_type<tc>, window_params = [{transform_indices = @transform_0, window_bounds = array<i64: 8, 8, 288>}, {pipeline_mode = #tpu.pipeline_mode<synchronous>, transform_indices = @transform_1, window_bounds = array<i64: 288, 128>}, {pipeline_mode = #tpu.pipeline_mode<synchronous>, transform_indices = @transform_2, window_bounds = array<i64: 1, 128>}, {pipeline_mode = #tpu.pipeline_mode<synchronous>, transform_indices = @transform_3, window_bounds = array<i64: 8, 128, 128>}, {pipeline_mode = #tpu.pipeline_mode<synchronous>, transform_indices = @transform_4, window_bounds = array<i64: 1, 128>}, {transform_indices = @transform_5, window_bounds = array<i64: 8, 128>}]} {
    %cst = arith.constant 0.000000e+00 : f32
    %0 = vector.broadcast %cst : f32 to vector<8x128xf32>
    %c0 = arith.constant 0 : index
    %c0_0 = arith.constant 0 : index
    %c0_1 = arith.constant 0 : index
    %1 = vector.load %arg1[%c0, %c0_0, %c0_1] : memref<8x8x288xbf16, #tpu.memory_space<vmem>>, vector<1x8x288xbf16>
    %2 = vector.shape_cast %1 : vector<1x8x288xbf16> to vector<8x288xbf16>
    %c0_2 = arith.constant 0 : index
    %c0_3 = arith.constant 0 : index
    %3 = vector.load %arg2[%c0_2, %c0_3] : memref<288x128xbf16, #tpu.memory_space<vmem>>, vector<288x128xbf16>
    %cst_4 = arith.constant dense<0.000000e+00> : vector<8x128xf32>
    %4 = tpu.matmul %2, %3, %cst_4 {dimension_numbers = #tpu.dot_dimension_numbers<[1], [0], [0], [1], [0, 0, 1, 1], [], []>} : vector<8x288xbf16>, vector<288x128xbf16>, vector<8x128xf32> -> vector<8x128xf32>
    %c0_5 = arith.constant 0 : index
    %c0_6 = arith.constant 0 : index
    %5 = vector.load %arg3[%c0_5, %c0_6] : memref<1x128xf32, #tpu.memory_space<vmem>>, vector<1x128xf32>
    %6 = vector.broadcast %5 : vector<1x128xf32> to vector<8x128xf32>
    %7 = arith.addf %4, %6 : vector<8x128xf32>
    %cst_7 = arith.constant 0.000000e+00 : f32
    %8 = vector.broadcast %cst_7 : f32 to vector<8x128xf32>
    %9 = arith.maximumf %7, %8 : vector<8x128xf32>
    %10 = arith.truncf %9 : vector<8x128xf32> to vector<8x128xbf16>
    %c0_8 = arith.constant 0 : index
    %c0_9 = arith.constant 0 : index
    %c0_10 = arith.constant 0 : index
    %11 = vector.load %arg4[%c0_8, %c0_9, %c0_10] : memref<8x128x128xbf16, #tpu.memory_space<vmem>>, vector<1x128x128xbf16>
    %12 = vector.shape_cast %11 : vector<1x128x128xbf16> to vector<128x128xbf16>
    %cst_11 = arith.constant dense<0.000000e+00> : vector<8x128xf32>
    %13 = tpu.matmul %10, %12, %cst_11 {dimension_numbers = #tpu.dot_dimension_numbers<[1], [0], [0], [1], [0, 0, 1, 1], [], []>} : vector<8x128xbf16>, vector<128x128xbf16>, vector<8x128xf32> -> vector<8x128xf32>
    %14 = arith.addf %0, %13 : vector<8x128xf32>
    %c1 = arith.constant 1 : index
    %c0_12 = arith.constant 0 : index
    %c0_13 = arith.constant 0 : index
    %15 = vector.load %arg1[%c1, %c0_12, %c0_13] : memref<8x8x288xbf16, #tpu.memory_space<vmem>>, vector<1x8x288xbf16>
    %16 = vector.shape_cast %15 : vector<1x8x288xbf16> to vector<8x288xbf16>
    %c0_14 = arith.constant 0 : index
    %c0_15 = arith.constant 0 : index
    %17 = vector.load %arg2[%c0_14, %c0_15] : memref<288x128xbf16, #tpu.memory_space<vmem>>, vector<288x128xbf16>
    %cst_16 = arith.constant dense<0.000000e+00> : vector<8x128xf32>
    %18 = tpu.matmul %16, %17, %cst_16 {dimension_numbers = #tpu.dot_dimension_numbers<[1], [0], [0], [1], [0, 0, 1, 1], [], []>} : vector<8x288xbf16>, vector<288x128xbf16>, vector<8x128xf32> -> vector<8x128xf32>
    %c0_17 = arith.constant 0 : index
    %c0_18 = arith.constant 0 : index
    %19 = vector.load %arg3[%c0_17, %c0_18] : memref<1x128xf32, #tpu.memory_space<vmem>>, vector<1x128xf32>
    %20 = vector.broadcast %19 : vector<1x128xf32> to vector<8x128xf32>
    %21 = arith.addf %18, %20 : vector<8x128xf32>
    %cst_19 = arith.constant 0.000000e+00 : f32
    %22 = vector.broadcast %cst_19 : f32 to vector<8x128xf32>
    %23 = arith.maximumf %21, %22 : vector<8x128xf32>
    %24 = arith.truncf %23 : vector<8x128xf32> to vector<8x128xbf16>
    %c1_20 = arith.constant 1 : index
    %c0_21 = arith.constant 0 : index
    %c0_22 = arith.constant 0 : index
    %25 = vector.load %arg4[%c1_20, %c0_21, %c0_22] : memref<8x128x128xbf16, #tpu.memory_space<vmem>>, vector<1x128x128xbf16>
    %26 = vector.shape_cast %25 : vector<1x128x128xbf16> to vector<128x128xbf16>
    %cst_23 = arith.constant dense<0.000000e+00> : vector<8x128xf32>
    %27 = tpu.matmul %24, %26, %cst_23 {dimension_numbers = #tpu.dot_dimension_numbers<[1], [0], [0], [1], [0, 0, 1, 1], [], []>} : vector<8x128xbf16>, vector<128x128xbf16>, vector<8x128xf32> -> vector<8x128xf32>
    %28 = arith.addf %14, %27 : vector<8x128xf32>
    %c2 = arith.constant 2 : index
    %c0_24 = arith.constant 0 : index
    %c0_25 = arith.constant 0 : index
    %29 = vector.load %arg1[%c2, %c0_24, %c0_25] : memref<8x8x288xbf16, #tpu.memory_space<vmem>>, vector<1x8x288xbf16>
    %30 = vector.shape_cast %29 : vector<1x8x288xbf16> to vector<8x288xbf16>
    %c0_26 = arith.constant 0 : index
    %c0_27 = arith.constant 0 : index
    %31 = vector.load %arg2[%c0_26, %c0_27] : memref<288x128xbf16, #tpu.memory_space<vmem>>, vector<288x128xbf16>
    %cst_28 = arith.constant dense<0.000000e+00> : vector<8x128xf32>
    %32 = tpu.matmul %30, %31, %cst_28 {dimension_numbers = #tpu.dot_dimension_numbers<[1], [0], [0], [1], [0, 0, 1, 1], [], []>} : vector<8x288xbf16>, vector<288x128xbf16>, vector<8x128xf32> -> vector<8x128xf32>
    %c0_29 = arith.constant 0 : index
    %c0_30 = arith.constant 0 : index
    %33 = vector.load %arg3[%c0_29, %c0_30] : memref<1x128xf32, #tpu.memory_space<vmem>>, vector<1x128xf32>
    %34 = vector.broadcast %33 : vector<1x128xf32> to vector<8x128xf32>
    %35 = arith.addf %32, %34 : vector<8x128xf32>
    %cst_31 = arith.constant 0.000000e+00 : f32
    %36 = vector.broadcast %cst_31 : f32 to vector<8x128xf32>
    %37 = arith.maximumf %35, %36 : vector<8x128xf32>
    %38 = arith.truncf %37 : vector<8x128xf32> to vector<8x128xbf16>
    %c2_32 = arith.constant 2 : index
    %c0_33 = arith.constant 0 : index
    %c0_34 = arith.constant 0 : index
    %39 = vector.load %arg4[%c2_32, %c0_33, %c0_34] : memref<8x128x128xbf16, #tpu.memory_space<vmem>>, vector<1x128x128xbf16>
    %40 = vector.shape_cast %39 : vector<1x128x128xbf16> to vector<128x128xbf16>
    %cst_35 = arith.constant dense<0.000000e+00> : vector<8x128xf32>
    %41 = tpu.matmul %38, %40, %cst_35 {dimension_numbers = #tpu.dot_dimension_numbers<[1], [0], [0], [1], [0, 0, 1, 1], [], []>} : vector<8x128xbf16>, vector<128x128xbf16>, vector<8x128xf32> -> vector<8x128xf32>
    %42 = arith.addf %28, %41 : vector<8x128xf32>
    %c3 = arith.constant 3 : index
    %c0_36 = arith.constant 0 : index
    %c0_37 = arith.constant 0 : index
    %43 = vector.load %arg1[%c3, %c0_36, %c0_37] : memref<8x8x288xbf16, #tpu.memory_space<vmem>>, vector<1x8x288xbf16>
    %44 = vector.shape_cast %43 : vector<1x8x288xbf16> to vector<8x288xbf16>
    %c0_38 = arith.constant 0 : index
    %c0_39 = arith.constant 0 : index
    %45 = vector.load %arg2[%c0_38, %c0_39] : memref<288x128xbf16, #tpu.memory_space<vmem>>, vector<288x128xbf16>
    %cst_40 = arith.constant dense<0.000000e+00> : vector<8x128xf32>
    %46 = tpu.matmul %44, %45, %cst_40 {dimension_numbers = #tpu.dot_dimension_numbers<[1], [0], [0], [1], [0, 0, 1, 1], [], []>} : vector<8x288xbf16>, vector<288x128xbf16>, vector<8x128xf32> -> vector<8x128xf32>
    %c0_41 = arith.constant 0 : index
    %c0_42 = arith.constant 0 : index
    %47 = vector.load %arg3[%c0_41, %c0_42] : memref<1x128xf32, #tpu.memory_space<vmem>>, vector<1x128xf32>
    %48 = vector.broadcast %47 : vector<1x128xf32> to vector<8x128xf32>
    %49 = arith.addf %46, %48 : vector<8x128xf32>
    %cst_43 = arith.constant 0.000000e+00 : f32
    %50 = vector.broadcast %cst_43 : f32 to vector<8x128xf32>
    %51 = arith.maximumf %49, %50 : vector<8x128xf32>
    %52 = arith.truncf %51 : vector<8x128xf32> to vector<8x128xbf16>
    %c3_44 = arith.constant 3 : index
    %c0_45 = arith.constant 0 : index
    %c0_46 = arith.constant 0 : index
    %53 = vector.load %arg4[%c3_44, %c0_45, %c0_46] : memref<8x128x128xbf16, #tpu.memory_space<vmem>>, vector<1x128x128xbf16>
    %54 = vector.shape_cast %53 : vector<1x128x128xbf16> to vector<128x128xbf16>
    %cst_47 = arith.constant dense<0.000000e+00> : vector<8x128xf32>
    %55 = tpu.matmul %52, %54, %cst_47 {dimension_numbers = #tpu.dot_dimension_numbers<[1], [0], [0], [1], [0, 0, 1, 1], [], []>} : vector<8x128xbf16>, vector<128x128xbf16>, vector<8x128xf32> -> vector<8x128xf32>
    %56 = arith.addf %42, %55 : vector<8x128xf32>
    %c4 = arith.constant 4 : index
    %c0_48 = arith.constant 0 : index
    %c0_49 = arith.constant 0 : index
    %57 = vector.load %arg1[%c4, %c0_48, %c0_49] : memref<8x8x288xbf16, #tpu.memory_space<vmem>>, vector<1x8x288xbf16>
    %58 = vector.shape_cast %57 : vector<1x8x288xbf16> to vector<8x288xbf16>
    %c0_50 = arith.constant 0 : index
    %c0_51 = arith.constant 0 : index
    %59 = vector.load %arg2[%c0_50, %c0_51] : memref<288x128xbf16, #tpu.memory_space<vmem>>, vector<288x128xbf16>
    %cst_52 = arith.constant dense<0.000000e+00> : vector<8x128xf32>
    %60 = tpu.matmul %58, %59, %cst_52 {dimension_numbers = #tpu.dot_dimension_numbers<[1], [0], [0], [1], [0, 0, 1, 1], [], []>} : vector<8x288xbf16>, vector<288x128xbf16>, vector<8x128xf32> -> vector<8x128xf32>
    %c0_53 = arith.constant 0 : index
    %c0_54 = arith.constant 0 : index
    %61 = vector.load %arg3[%c0_53, %c0_54] : memref<1x128xf32, #tpu.memory_space<vmem>>, vector<1x128xf32>
    %62 = vector.broadcast %61 : vector<1x128xf32> to vector<8x128xf32>
    %63 = arith.addf %60, %62 : vector<8x128xf32>
    %cst_55 = arith.constant 0.000000e+00 : f32
    %64 = vector.broadcast %cst_55 : f32 to vector<8x128xf32>
    %65 = arith.maximumf %63, %64 : vector<8x128xf32>
    %66 = arith.truncf %65 : vector<8x128xf32> to vector<8x128xbf16>
    %c4_56 = arith.constant 4 : index
    %c0_57 = arith.constant 0 : index
    %c0_58 = arith.constant 0 : index
    %67 = vector.load %arg4[%c4_56, %c0_57, %c0_58] : memref<8x128x128xbf16, #tpu.memory_space<vmem>>, vector<1x128x128xbf16>
    %68 = vector.shape_cast %67 : vector<1x128x128xbf16> to vector<128x128xbf16>
    %cst_59 = arith.constant dense<0.000000e+00> : vector<8x128xf32>
    %69 = tpu.matmul %66, %68, %cst_59 {dimension_numbers = #tpu.dot_dimension_numbers<[1], [0], [0], [1], [0, 0, 1, 1], [], []>} : vector<8x128xbf16>, vector<128x128xbf16>, vector<8x128xf32> -> vector<8x128xf32>
    %70 = arith.addf %56, %69 : vector<8x128xf32>
    %c5 = arith.constant 5 : index
    %c0_60 = arith.constant 0 : index
    %c0_61 = arith.constant 0 : index
    %71 = vector.load %arg1[%c5, %c0_60, %c0_61] : memref<8x8x288xbf16, #tpu.memory_space<vmem>>, vector<1x8x288xbf16>
    %72 = vector.shape_cast %71 : vector<1x8x288xbf16> to vector<8x288xbf16>
    %c0_62 = arith.constant 0 : index
    %c0_63 = arith.constant 0 : index
    %73 = vector.load %arg2[%c0_62, %c0_63] : memref<288x128xbf16, #tpu.memory_space<vmem>>, vector<288x128xbf16>
    %cst_64 = arith.constant dense<0.000000e+00> : vector<8x128xf32>
    %74 = tpu.matmul %72, %73, %cst_64 {dimension_numbers = #tpu.dot_dimension_numbers<[1], [0], [0], [1], [0, 0, 1, 1], [], []>} : vector<8x288xbf16>, vector<288x128xbf16>, vector<8x128xf32> -> vector<8x128xf32>
    %c0_65 = arith.constant 0 : index
    %c0_66 = arith.constant 0 : index
    %75 = vector.load %arg3[%c0_65, %c0_66] : memref<1x128xf32, #tpu.memory_space<vmem>>, vector<1x128xf32>
    %76 = vector.broadcast %75 : vector<1x128xf32> to vector<8x128xf32>
    %77 = arith.addf %74, %76 : vector<8x128xf32>
    %cst_67 = arith.constant 0.000000e+00 : f32
    %78 = vector.broadcast %cst_67 : f32 to vector<8x128xf32>
    %79 = arith.maximumf %77, %78 : vector<8x128xf32>
    %80 = arith.truncf %79 : vector<8x128xf32> to vector<8x128xbf16>
    %c5_68 = arith.constant 5 : index
    %c0_69 = arith.constant 0 : index
    %c0_70 = arith.constant 0 : index
    %81 = vector.load %arg4[%c5_68, %c0_69, %c0_70] : memref<8x128x128xbf16, #tpu.memory_space<vmem>>, vector<1x128x128xbf16>
    %82 = vector.shape_cast %81 : vector<1x128x128xbf16> to vector<128x128xbf16>
    %cst_71 = arith.constant dense<0.000000e+00> : vector<8x128xf32>
    %83 = tpu.matmul %80, %82, %cst_71 {dimension_numbers = #tpu.dot_dimension_numbers<[1], [0], [0], [1], [0, 0, 1, 1], [], []>} : vector<8x128xbf16>, vector<128x128xbf16>, vector<8x128xf32> -> vector<8x128xf32>
    %84 = arith.addf %70, %83 : vector<8x128xf32>
    %c6 = arith.constant 6 : index
    %c0_72 = arith.constant 0 : index
    %c0_73 = arith.constant 0 : index
    %85 = vector.load %arg1[%c6, %c0_72, %c0_73] : memref<8x8x288xbf16, #tpu.memory_space<vmem>>, vector<1x8x288xbf16>
    %86 = vector.shape_cast %85 : vector<1x8x288xbf16> to vector<8x288xbf16>
    %c0_74 = arith.constant 0 : index
    %c0_75 = arith.constant 0 : index
    %87 = vector.load %arg2[%c0_74, %c0_75] : memref<288x128xbf16, #tpu.memory_space<vmem>>, vector<288x128xbf16>
    %cst_76 = arith.constant dense<0.000000e+00> : vector<8x128xf32>
    %88 = tpu.matmul %86, %87, %cst_76 {dimension_numbers = #tpu.dot_dimension_numbers<[1], [0], [0], [1], [0, 0, 1, 1], [], []>} : vector<8x288xbf16>, vector<288x128xbf16>, vector<8x128xf32> -> vector<8x128xf32>
    %c0_77 = arith.constant 0 : index
    %c0_78 = arith.constant 0 : index
    %89 = vector.load %arg3[%c0_77, %c0_78] : memref<1x128xf32, #tpu.memory_space<vmem>>, vector<1x128xf32>
    %90 = vector.broadcast %89 : vector<1x128xf32> to vector<8x128xf32>
    %91 = arith.addf %88, %90 : vector<8x128xf32>
    %cst_79 = arith.constant 0.000000e+00 : f32
    %92 = vector.broadcast %cst_79 : f32 to vector<8x128xf32>
    %93 = arith.maximumf %91, %92 : vector<8x128xf32>
    %94 = arith.truncf %93 : vector<8x128xf32> to vector<8x128xbf16>
    %c6_80 = arith.constant 6 : index
    %c0_81 = arith.constant 0 : index
    %c0_82 = arith.constant 0 : index
    %95 = vector.load %arg4[%c6_80, %c0_81, %c0_82] : memref<8x128x128xbf16, #tpu.memory_space<vmem>>, vector<1x128x128xbf16>
    %96 = vector.shape_cast %95 : vector<1x128x128xbf16> to vector<128x128xbf16>
    %cst_83 = arith.constant dense<0.000000e+00> : vector<8x128xf32>
    %97 = tpu.matmul %94, %96, %cst_83 {dimension_numbers = #tpu.dot_dimension_numbers<[1], [0], [0], [1], [0, 0, 1, 1], [], []>} : vector<8x128xbf16>, vector<128x128xbf16>, vector<8x128xf32> -> vector<8x128xf32>
    %98 = arith.addf %84, %97 : vector<8x128xf32>
    %c7 = arith.constant 7 : index
    %c0_84 = arith.constant 0 : index
    %c0_85 = arith.constant 0 : index
    %99 = vector.load %arg1[%c7, %c0_84, %c0_85] : memref<8x8x288xbf16, #tpu.memory_space<vmem>>, vector<1x8x288xbf16>
    %100 = vector.shape_cast %99 : vector<1x8x288xbf16> to vector<8x288xbf16>
    %c0_86 = arith.constant 0 : index
    %c0_87 = arith.constant 0 : index
    %101 = vector.load %arg2[%c0_86, %c0_87] : memref<288x128xbf16, #tpu.memory_space<vmem>>, vector<288x128xbf16>
    %cst_88 = arith.constant dense<0.000000e+00> : vector<8x128xf32>
    %102 = tpu.matmul %100, %101, %cst_88 {dimension_numbers = #tpu.dot_dimension_numbers<[1], [0], [0], [1], [0, 0, 1, 1], [], []>} : vector<8x288xbf16>, vector<288x128xbf16>, vector<8x128xf32> -> vector<8x128xf32>
    %c0_89 = arith.constant 0 : index
    %c0_90 = arith.constant 0 : index
    %103 = vector.load %arg3[%c0_89, %c0_90] : memref<1x128xf32, #tpu.memory_space<vmem>>, vector<1x128xf32>
    %104 = vector.broadcast %103 : vector<1x128xf32> to vector<8x128xf32>
    %105 = arith.addf %102, %104 : vector<8x128xf32>
    %cst_91 = arith.constant 0.000000e+00 : f32
    %106 = vector.broadcast %cst_91 : f32 to vector<8x128xf32>
    %107 = arith.maximumf %105, %106 : vector<8x128xf32>
    %108 = arith.truncf %107 : vector<8x128xf32> to vector<8x128xbf16>
    %c7_92 = arith.constant 7 : index
    %c0_93 = arith.constant 0 : index
    %c0_94 = arith.constant 0 : index
    %109 = vector.load %arg4[%c7_92, %c0_93, %c0_94] : memref<8x128x128xbf16, #tpu.memory_space<vmem>>, vector<1x128x128xbf16>
    %110 = vector.shape_cast %109 : vector<1x128x128xbf16> to vector<128x128xbf16>
    %cst_95 = arith.constant dense<0.000000e+00> : vector<8x128xf32>
    %111 = tpu.matmul %108, %110, %cst_95 {dimension_numbers = #tpu.dot_dimension_numbers<[1], [0], [0], [1], [0, 0, 1, 1], [], []>} : vector<8x128xbf16>, vector<128x128xbf16>, vector<8x128xf32> -> vector<8x128xf32>
    %112 = arith.addf %98, %111 : vector<8x128xf32>
    %c0_96 = arith.constant 0 : index
    %c0_97 = arith.constant 0 : index
    %113 = vector.load %arg5[%c0_96, %c0_97] : memref<1x128xf32, #tpu.memory_space<vmem>>, vector<1x128xf32>
    %114 = vector.broadcast %113 : vector<1x128xf32> to vector<8x128xf32>
    %115 = arith.addf %112, %114 : vector<8x128xf32>
    %cst_98 = arith.constant 0.000000e+00 : f32
    %116 = vector.broadcast %cst_98 : f32 to vector<8x128xf32>
    %117 = arith.maximumf %115, %116 : vector<8x128xf32>
    %c0_99 = arith.constant 0 : index
    %c0_100 = arith.constant 0 : index
    %118 = vector.load %arg6[%c0_99, %c0_100] : memref<8x128xf32, #tpu.memory_space<vmem>>, vector<8x128xf32>
    tpu.vector_store %arg6[%c0_99, %c0_100], %117 {strides = array<i32>} : memref<8x128xf32, #tpu.memory_space<vmem>>, vector<8x128xf32>,
    return
  }
  func.func @transform_0(%arg0: i32) -> (i32, i32, i32) {
    %c0_i32 = arith.constant 0 : i32
    %c0_i32_0 = arith.constant 0 : i32
    %c0_i32_1 = arith.constant 0 : i32
    return %c0_i32, %arg0, %c0_i32_0 : i32, i32, i32
  }
  func.func @transform_1(%arg0: i32) -> (i32, i32) {
    %c0_i32 = arith.constant 0 : i32
    %c0_i32_0 = arith.constant 0 : i32
    %c0_i32_1 = arith.constant 0 : i32
    return %c0_i32, %c0_i32_0 : i32, i32
  }
  func.func @transform_2(%arg0: i32) -> (i32, i32) {
    %c0_i32 = arith.constant 0 : i32
    %c0_i32_0 = arith.constant 0 : i32
    %c0_i32_1 = arith.constant 0 : i32
    return %c0_i32, %c0_i32_0 : i32, i32
  }
  func.func @transform_3(%arg0: i32) -> (i32, i32, i32) {
    %c0_i32 = arith.constant 0 : i32
    %c0_i32_0 = arith.constant 0 : i32
    %c0_i32_1 = arith.constant 0 : i32
    %c0_i32_2 = arith.constant 0 : i32
    return %c0_i32, %c0_i32_0, %c0_i32_1 : i32, i32, i32
  }
  func.func @transform_4(%arg0: i32) -> (i32, i32) {
    %c0_i32 = arith.constant 0 : i32
    %c0_i32_0 = arith.constant 0 : i32
    %c0_i32_1 = arith.constant 0 : i32
    return %c0_i32, %c0_i32_0 : i32, i32
  }
  func.func @transform_5(%arg0: i32) -> (i32, i32) {
    %c0_i32 = arith.constant 0 : i32
    %c0_i32_0 = arith.constant 0 : i32
    return %arg0, %c0_i32 : i32, i32
  }
}

</mosaic_0001>

<bundles_post_ra>
// kernel: conv_head_forward.1
= control target key start
LH: loop header
LB: loop body
LE: loop exit
PB: predicated region body
PF: predicated region fallthrough
CT: control target
= control target key end

     0   :  { %v2679_v0 = vmov 0.0   ;;  %vm2680_vm0 = vmmov 0   ;;  %vm184_vm1 = vcmask 261120   ;;  %s3416_s1 = inlined_call_operand.vmem [shape: bf16[288,128], index: 1, kind: input, shape index: {}]   ;;  %s3417_s0 = inlined_call_operand.vmem [shape: bf16[8,8,288], index: 0, kind: input, shape index: {}]   ;;  %s3418_s3 = inlined_call_operand.vmem [shape: bf16[8,128,128], index: 3, kind: input, shape index: {}]   ;;  %s3419_s2 = inlined_call_operand.vmem [shape: f32[1,128], index: 2, kind: input, shape index: {}]   ;;  %s3420_s4 = inlined_call_operand.vmem [shape: f32[1,128], index: 4, kind: input, shape index: {}]   ;;  %s3421_s5 = inlined_call_operand.vmem [shape: f32[8,128], index: 5, kind: output, shape index: {}]  }
   0x1   :  { %2329 = vmatprep.subr.bf16.mxu1 %v2679_v0  ;;  %v2715_v1 = vld [vmem:[%s3416_s1 + $0x40] sm:$0xff]   ;;  %2333 = vmatprep.mubr.msk.bf16.mxu1 %vm2680_vm0, %v2679_v0  ;;  %v2734_v4 = vld [vmem:[%s3416_s1 + $0x48] sm:$0xff]   ;;  %v2756_v8 = vld [vmem:[%s3416_s1 + $0x50] sm:$0xff]  }
   0x2   :  { %v2722_v2 = vld [vmem:[%s3416_s1 + $0x80] sm:$0xff]   ;;  %2057 = vmatprep.subr.bf16.mxu0 %v2715_v1  ;;  %v2741_v5 = vld [vmem:[%s3416_s1 + $0x88] sm:$0xff]   ;;  %v2763_v9 = vld [vmem:[%s3416_s1 + $0x10] sm:$0xff]  }
   0x3   :  { %v2728_v3 = vld [vmem:[%s3416_s1] sm:$0xff]   ;;  %2330 = vmatpush3.bf16.msra.mxu1 %v2722_v2  ;;  %v2747_v6 = vld [vmem:[%s3416_s1 + $0x8] sm:$0xff]   ;;  %v2769_v10 = vld [vmem:[%s3416_s1 + $0x58] sm:$0xff]  }
   0x4   :  { %2058 = vmatpush3.bf16.msra.mxu0 %v2728_v3  ;;  %2331 = vmatprep.subr.bf16.mxu1 %v2679_v0  ;;  %v2561_v7 = vld [vmem:[%s3417_s0 + $0x8] ss:$0 sps:$4 sm:$0xff]   ;;  %v2778_v11 = vld [vmem:[%s3416_s1 + $0x18] sm:$0xff]   ;;  %v2784_v12 = vld [vmem:[%s3416_s1 + $0x60] sm:$0xff]  }
   0x5   :  { %2059 = vmatprep.subr.bf16.mxu0 %v2734_v4  ;;  %v2792_v13 = vld [vmem:[%s3416_s1 + $0x20] sm:$0xff]   ;;  %v2798_v14 = vld [vmem:[%s3416_s1 + $0x68] sm:$0xff]   ;;  %v2812_v17 = vld [vmem:[%s3416_s1 + $0x70] sm:$0xff]  }
   0x6   :  { %v2803_v15 = vld [vmem:[%s3416_s1 + $0x28] sm:$0xff]   ;;  %v21_v16 = vld [vmem:[%s3417_s0] sm:$0xff]  ;;  %v2826_v21 = vld [vmem:[%s3416_s1 + $0x30] sm:$0xff]  }
   0x7   :  { %2332 = vmatpush3.bf16.msra.mxu1 %v2741_v5  ;;  %v1817_v18 = vcombine.high %v21_v16, %v21_v16  ;;  %v1838_v19 = vld [vmem:[%s3417_s0 + $0xc] sm:$0xff]  ;;  %v2832_v22 = vld [vmem:[%s3416_s1 + $0x78] sm:$0xff]   ;;  %v1816_v24 = vcombine.low %v21_v16, %v21_v16  ;;  %v2578_v26 = vld [vmem:[%s3417_s0 + $0x14] ss:$0 sps:$4 sm:$0xff]  }
   0x8   :  { %2060 = vmatpush3.bf16.msra.mxu0 %v2747_v6  ;;  %2082 = vmatprep.subr.bf16.mxu1 %v2715_v1  ;;  %v1841_v20 = vcombine.high %v1838_v19, %v1838_v19  ;;  %v2840_v23 = vld [vmem:[%s3416_s1 + $0x38] sm:$0xff]   ;;  %v1840_v25 = vcombine.low %v1838_v19, %v1838_v19  ;;  %v2579_v27 = vld [vmem:[%s3418_s3] sm:$0xff]   ;;  %v2580_v28 = vld [vmem:[%s3418_s3 + $0x8] sm:$0xff]  }
   0x9   :  { %2061 = vmatprep.subr.bf16.mxu0 %v2756_v8  ;;  %220 = vmatprep.mubr.bf16.mxu0 %v1817_v18  ;;  %v2582_v29 = vld [vmem:[%s3418_s3 + $0x40] sm:$0xff]   ;;  %v2584_v30 = vld [vmem:[%s3418_s3 + $0x48] sm:$0xff]   ;;  %v2581_v31 = vld [vmem:[%s3418_s3 + $0x10] sm:$0xff]  }
   0xa   :  { %2334 = vmatmul.mubr.msk.bf16.vlgmr.msra.gmra.mrb[0].mxu1 %vm184_vm1, %v2561_v7  ;;  %v2586_v32 = vld [vmem:[%s3418_s3 + $0x50] sm:$0xff]   ;;  %v2583_v33 = vld [vmem:[%s3418_s3 + $0x18] sm:$0xff]   ;;  %v2585_v34 = vld [vmem:[%s3418_s3 + $0x20] sm:$0xff]  }
   0xb   :  { %2083 = vmatpush3.bf16.msra.mxu1 %v2728_v3  ;;  %334 = vmatprep.mubr.bf16.mxu1 %v1841_v20  ;;  %v2587_v35 = vld [vmem:[%s3418_s3 + $0x28] sm:$0xff]   ;;  %v2588_v36 = vld [vmem:[%s3418_s3 + $0x58] sm:$0xff]   ;;  %v2589_v37 = vld [vmem:[%s3418_s3 + $0x30] sm:$0xff]  }
   0xc   :  { %2062 = vmatpush3.bf16.msra.mxu0 %v2763_v9  ;;  %2084 = vmatprep.subr.bf16.mxu1 %v2734_v4  ;;  %v2590_v38 = vld [vmem:[%s3418_s3 + $0x60] sm:$0xff]   ;;  %v2591_v39 = vld [vmem:[%s3418_s3 + $0x38] sm:$0xff]   ;;  %v2592_v40 = vld [vmem:[%s3418_s3 + $0x68] sm:$0xff]  }
   0xd   :  { %2063 = vmatprep.subr.bf16.mxu0 %v2769_v10  ;;  %v2593_v41 = vld [vmem:[%s3418_s3 + $0x70] sm:$0xff]   ;;  %v2594_v42 = vld [vmem:[%s3418_s3 + $0x78] sm:$0xff]   ;;  %v2932_v48 = vld [vmem:[%s3419_s2] ss:$0 sm:$0xff] }
   0xe   :  { %v1876_v18 = vld [vmem:[%s3417_s0 + $0x18] sm:$0xff]  ;;  %v2597_v19 = vld [vmem:[%s3417_s0 + $0x20] ss:$0 sps:$4 sm:$0xff]  }
   0xf   :  { %2085 = vmatpush3.bf16.msra.mxu1 %v2747_v6 }
  0x10   :  { %2064 = vmatpush3.bf16.msra.mxu0 %v2778_v11  ;;  %2086 = vmatprep.subr.bf16.mxu1 %v2756_v8 }
  0x11   :  { %2065 = vmatprep.subr.bf16.mxu0 %v2784_v12 }
  0x13   :  { %2087 = vmatpush3.bf16.msra.mxu1 %v2763_v9 }
  0x14   :  { %2066 = vmatpush3.bf16.msra.mxu0 %v2792_v13  ;;  %2088 = vmatprep.subr.bf16.mxu1 %v2769_v10 }
  0x15   :  { %2067 = vmatprep.subr.bf16.mxu0 %v2798_v14 }
  0x17   :  { %2089 = vmatpush3.bf16.msra.mxu1 %v2778_v11 }
  0x18   :  { %2068 = vmatpush3.bf16.msra.mxu0 %v2803_v15  ;;  %2090 = vmatprep.subr.bf16.mxu1 %v2784_v12 }
  0x19   :  { %2069 = vmatprep.subr.bf16.mxu0 %v2812_v17 }
  0x1b   :  { %2091 = vmatpush3.bf16.msra.mxu1 %v2792_v13 }
  0x1c   :  { %2070 = vmatpush3.bf16.msra.mxu0 %v2826_v21  ;;  %2092 = vmatprep.subr.bf16.mxu1 %v2798_v14 }
  0x1d   :  { %2071 = vmatprep.subr.bf16.mxu0 %v2832_v22 }
  0x1f   :  { %2093 = vmatpush3.bf16.msra.mxu1 %v2803_v15 }
  0x20   :  { %2072 = vmatpush3.bf16.msra.mxu0 %v2840_v23  ;;  %2094 = vmatprep.subr.bf16.mxu1 %v2812_v17 }
  0x21   :  { %2345 = vmatprep.subr.bf16.mxu0 %v2679_v0 }
  0x23   :  { %221 = vmatmul.mubr.bf16.vlgmr.msra.gmra.mrb[0].mxu0 %v1816_v24  ;;  %2095 = vmatpush3.bf16.msra.mxu1 %v2826_v21 }
  0x24   :  { %2096 = vmatprep.subr.bf16.mxu1 %v2832_v22  ;;  %2361 = vmatprep.mubr.msk.bf16.mxu0 %vm2680_vm0, %v2679_v0 }
  0x25   :  { %2346 = vmatpush3.bf16.msra.mxu0 %v2582_v29  ;;  %v2598_v29 = vld [vmem:[%s3418_s3 + $0x80] sm:$0xff]  }
  0x26   :  { %2347 = vmatprep.subr.bf16.mxu0 %v2679_v0 }
  0x27   :  { %2097 = vmatpush3.bf16.msra.mxu1 %v2840_v23 }
  0x28   :  { %2337 = vmatprep.subr.bf16.mxu1 %v2679_v0 }
  0x29   :  { %2348 = vmatpush3.bf16.msra.mxu0 %v2584_v30  ;;  %v2599_v30 = vld [vmem:[%s3418_s3 + $0x88] sm:$0xff]  }
  0x2a   :  { %335 = vmatmul.mubr.bf16.vlgmr.msra.gmra.mrb[4].mxu1 %v1840_v25  ;;  %2349 = vmatprep.subr.bf16.mxu0 %v2679_v0 }
  0x2b   :  { %2338 = vmatpush3.bf16.msra.mxu1 %v2722_v2  ;;  %2341 = vmatprep.mubr.msk.bf16.mxu1 %vm2680_vm0, %v2679_v0 }
  0x2c   :  { %2339 = vmatprep.subr.bf16.mxu1 %v2679_v0 }
  0x2d   :  { %2350 = vmatpush3.bf16.msra.mxu0 %v2586_v32  ;;  %v2601_v32 = vld [vmem:[%s3418_s3 + $0x98] sm:$0xff]  }
  0x2e   :  { %2351 = vmatprep.subr.bf16.mxu0 %v2679_v0 }
  0x2f   :  { %2340 = vmatpush3.bf16.msra.mxu1 %v2741_v5 }
  0x30   :  { %2365 = vmatprep.subr.bf16.mxu1 %v2679_v0 }
  0x31   :  { %2352 = vmatpush3.bf16.msra.mxu0 %v2588_v36  ;;  %v2605_v36 = vld [vmem:[%s3418_s3 + $0xb8] sm:$0xff]  }
  0x32   :  { %2342 = vmatmul.mubr.msk.bf16.vlgmr.msra.gmra.mrb[8].mxu1 %vm184_vm1, %v2578_v26  ;;  %2353 = vmatprep.subr.bf16.mxu0 %v2679_v0  ;;  %v1879_v26 = vcombine.high %v1876_v18, %v1876_v18 }
  0x33   :  { %2381 = vmatprep.mubr.msk.bf16.mxu1 %vm2680_vm0, %v2679_v0  ;;  %2366 = vmatpush3.bf16.msra.mxu1 %v2579_v27 }
  0x34   :  { %2367 = vmatprep.subr.bf16.mxu1 %v2679_v0 }
  0x35   :  { %2354 = vmatpush3.bf16.msra.mxu0 %v2590_v38 }
  0x36   :  { %2355 = vmatprep.subr.bf16.mxu0 %v2679_v0 }
  0x37   :  { %2368 = vmatpush3.bf16.msra.mxu1 %v2580_v28  ;;  %v1878_v28 = vcombine.low %v1876_v18, %v1876_v18  ;;  %v2612_v18 = vld [vmem:[%s3418_s3 + $0xd8] sm:$0xff]  }
  0x38   :  { %2369 = vmatprep.subr.bf16.mxu1 %v2679_v0 }
  0x39   :  { %2356 = vmatpush3.bf16.msra.mxu0 %v2592_v40 }
  0x3a   :  { %2357 = vmatprep.subr.bf16.mxu0 %v2679_v0 }
  0x3b   :  { %2370 = vmatpush3.bf16.msra.mxu1 %v2581_v31  ;;  %v2600_v31 = vld [vmem:[%s3418_s3 + $0x90] sm:$0xff]  }
  0x3c   :  { %2371 = vmatprep.subr.bf16.mxu1 %v2679_v0 }
  0x3d   :  { %2358 = vmatpush3.bf16.msra.mxu0 %v2593_v41 }
  0x3e   :  { %2359 = vmatprep.subr.bf16.mxu0 %v2679_v0 }
  0x3f   :  { %2372 = vmatpush3.bf16.msra.mxu1 %v2583_v33  ;;  %v2602_v33 = vld [vmem:[%s3418_s3 + $0xa0] sm:$0xff]  }
  0x40   :  { %2373 = vmatprep.subr.bf16.mxu1 %v2679_v0 }
  0x41   :  { %2360 = vmatpush3.bf16.msra.mxu0 %v2594_v42 }
  0x42   :  { %2125 = vmatprep.subr.bf16.mxu0 %v2715_v1 }
  0x43   :  { %2374 = vmatpush3.bf16.msra.mxu1 %v2585_v34  ;;  %v2603_v34 = vld [vmem:[%s3418_s3 + $0xa8] sm:$0xff]  }
  0x44   :  { %2375 = vmatprep.subr.bf16.mxu1 %v2679_v0 }
  0x47   :  { %2376 = vmatpush3.bf16.msra.mxu1 %v2587_v35  ;;  %v2604_v35 = vld [vmem:[%s3418_s3 + $0xb0] sm:$0xff]  }
  0x48   :  { %2377 = vmatprep.subr.bf16.mxu1 %v2679_v0 }
  0x4b   :  { %2378 = vmatpush3.bf16.msra.mxu1 %v2589_v37  ;;  %v1906_v37 = vld [vmem:[%s3417_s0 + $0x24] sm:$0xff] }
  0x4c   :  { %2379 = vmatprep.subr.bf16.mxu1 %v2679_v0  ;;  %v1909_v38 = vcombine.high %v1906_v37, %v1906_v37 }
  0x4f   :  { %2380 = vmatpush3.bf16.msra.mxu1 %v2591_v39  ;;  %v1908_v39 = vcombine.low %v1906_v37, %v1906_v37  ;;  %v2624_v37 = vld [vmem:[%s3418_s3 + $0x120] sm:$0xff]  }
  0x50   :  { %2385 = vmatprep.subr.bf16.mxu1 %v2679_v0 }
  0xdd   :  { %v262_v43 = vpop.f32.mrb[0].mxu1 }
  0xde   :  { %v2335_v44 = vpop.f32.mrb[1].mxu1 }
  0xdf   :  { %v265_v45 = vpop.f32.mrb[2].mxu1 }
  0xe0   :  { %v2336_v46 = vpop.f32.mrb[3].mxu1 }
  0xf6   :  { %v2073_v47 = vpop.f32.mrb[0].mxu0 }
  0xf7   :  { %v2074_v49 = vpop.f32.mrb[1].mxu0 }
  0xf8   :  { %v2075_v50 = vadd.f32 %v2074_v49, %v2073_v47  ;;  %v2076_v51 = vpop.f32.mrb[2].mxu0 }
  0xf9   :  { %v2077_v52 = vpop.f32.mrb[3].mxu0 }
  0xfa   :  { %v223_v53 = vadd.f32 %v2075_v50, %v2932_v48 }
  0xfc   :  { %v263_v54 = vadd.f32 %v262_v43, %v223_v53 }
  0xfd   :  { %v2098_v55 = vpop.f32.mrb[4].mxu1 }
  0xfe   :  { %v268_v56 = vmax.f32 %v263_v54, 0.0  ;;  %v2099_v57 = vpop.f32.mrb[5].mxu1 }
  0xff   :  { %v2100_v58 = vadd.f32 %v2099_v57, %v2098_v55  ;;  %v2101_v59 = vpop.f32.mrb[6].mxu1 }
 0x100   :  { %v269_v60 = vpack.c.bf16 %v268_v56, %v268_v56  ;;  %v2102_v61 = vpop.f32.mrb[7].mxu1 }
 0x101   :  { %v337_v62 = vadd.f32 %v2100_v58, %v2932_v48 }
 0x102   :  { %2382 = vmatmul.mubr.bf16.vlgmr.msra.gmra.mrb[12].mxu1 %v269_v60 }
 0x103   :  { %2386 = vmatpush3.bf16.msra.mxu1 %v2722_v2  ;;  %2389 = vmatprep.mubr.msk.bf16.mxu1 %vm2680_vm0, %v2679_v0 }
 0x104   :  { %2387 = vmatprep.subr.bf16.mxu1 %v2679_v0 }
 0x105   :  { %v376_v63 = vpop.f32.mrb[8].mxu1 }
 0x106   :  { %v377_v7 = vadd.f32 %v376_v63, %v337_v62  ;;  %v2343_v16 = vpop.f32.mrb[9].mxu1  ;;  %v2608_v62 = vld [vmem:[%s3417_s0 + $0x2c] ss:$0 sps:$4 sm:$0xff]   ;;  %v2609_v63 = vld [vmem:[%s3418_s3 + $0xc0] sm:$0xff]  }
 0x107   :  { %v379_v20 = vpop.f32.mrb[10].mxu1  ;;  %2388 = vmatpush3.bf16.msra.mxu1 %v2741_v5  ;;  %v2611_v16 = vld [vmem:[%s3418_s3 + $0xd0] sm:$0xff]  }
 0x108   :  { %v382_v24 = vmax.f32 %v377_v7, 0.0  ;;  %v2344_v25 = vpop.f32.mrb[11].mxu1  ;;  %2393 = vmatprep.subr.bf16.mxu1 %v2679_v0  ;;  %v2610_v7 = vld [vmem:[%s3418_s3 + $0xc8] sm:$0xff]  }
 0x10a   :  { %v383_v27 = vpack.c.bf16 %v382_v24, %v382_v24  ;;  %2390 = vmatmul.mubr.msk.bf16.vlgmr.msra.gmra.mrb[16].mxu1 %vm184_vm1, %v2597_v19  ;;  %v2613_v19 = vld [vmem:[%s3418_s3 + $0xe0] sm:$0xff]  }
 0x10b   :  { %2409 = vmatprep.mubr.msk.bf16.mxu1 %vm2680_vm0, %v2679_v0  ;;  %2394 = vmatpush3.bf16.msra.mxu1 %v2598_v29  ;;  %v2615_v29 = vld [vmem:[%s3418_s3 + $0xf0] sm:$0xff]  }
 0x10c   :  { %2362 = vmatmul.mubr.bf16.vlgmr.msra.gmra.mrb[4].mxu0 %v383_v27  ;;  %2395 = vmatprep.subr.bf16.mxu1 %v2679_v0  ;;  %v2614_v27 = vld [vmem:[%s3418_s3 + $0xe8] sm:$0xff]  }
 0x10d   :  { %2126 = vmatpush3.bf16.msra.mxu0 %v2728_v3  ;;  %625 = vmatprep.mubr.bf16.mxu0 %v1879_v26 }
 0x10e   :  { %2127 = vmatprep.subr.bf16.mxu0 %v2734_v4 }
 0x10f   :  { %2396 = vmatpush3.bf16.msra.mxu1 %v2599_v30  ;;  %v2616_v30 = vld [vmem:[%s3418_s3 + $0xf8] sm:$0xff]  }
 0x110   :  { %2397 = vmatprep.subr.bf16.mxu1 %v2679_v0 }
 0x111   :  { %2128 = vmatpush3.bf16.msra.mxu0 %v2747_v6 }
 0x112   :  { %2129 = vmatprep.subr.bf16.mxu0 %v2756_v8 }
 0x113   :  { %2398 = vmatpush3.bf16.msra.mxu1 %v2600_v31  ;;  %v1936_v31 = vld [vmem:[%s3417_s0 + $0x30] sm:$0xff] }
 0x114   :  { %2399 = vmatprep.subr.bf16.mxu1 %v2679_v0 }
 0x115   :  { %2130 = vmatpush3.bf16.msra.mxu0 %v2763_v9 }
 0x116   :  { %2131 = vmatprep.subr.bf16.mxu0 %v2769_v10 }
 0x117   :  { %2400 = vmatpush3.bf16.msra.mxu1 %v2601_v32  ;;  %v1939_v32 = vcombine.high %v1936_v31, %v1936_v31 }
 0x118   :  { %2401 = vmatprep.subr.bf16.mxu1 %v2679_v0 }
 0x119   :  { %2132 = vmatpush3.bf16.msra.mxu0 %v2778_v11 }
 0x11a   :  { %2133 = vmatprep.subr.bf16.mxu0 %v2784_v12 }
 0x11b   :  { %2402 = vmatpush3.bf16.msra.mxu1 %v2602_v33  ;;  %v1938_v33 = vcombine.low %v1936_v31, %v1936_v31  ;;  %v3225_v31 = vld [vmem:[%s3416_s1 + $0x10] sm:$0xff]  }
 0x11c   :  { %2403 = vmatprep.subr.bf16.mxu1 %v2679_v0 }
 0x11d   :  { %2134 = vmatpush3.bf16.msra.mxu0 %v2792_v13 }
 0x11e   :  { %2135 = vmatprep.subr.bf16.mxu0 %v2798_v14 }
 0x11f   :  { %2404 = vmatpush3.bf16.msra.mxu1 %v2603_v34  ;;  %v2619_v34 = vld [vmem:[%s3417_s0 + $0x38] ss:$0 sps:$4 sm:$0xff]  }
 0x120   :  { %2405 = vmatprep.subr.bf16.mxu1 %v2679_v0 }
 0x121   :  { %2136 = vmatpush3.bf16.msra.mxu0 %v2803_v15 }
 0x122   :  { %2137 = vmatprep.subr.bf16.mxu0 %v2812_v17 }
 0x123   :  { %2406 = vmatpush3.bf16.msra.mxu1 %v2604_v35  ;;  %v2620_v35 = vld [vmem:[%s3418_s3 + $0x100] sm:$0xff]  }
 0x124   :  { %2407 = vmatprep.subr.bf16.mxu1 %v2679_v0 }
 0x125   :  { %2138 = vmatpush3.bf16.msra.mxu0 %v2826_v21 }
 0x126   :  { %2139 = vmatprep.subr.bf16.mxu0 %v2832_v22 }
 0x127   :  { %2408 = vmatpush3.bf16.msra.mxu1 %v2605_v36  ;;  %v2623_v36 = vld [vmem:[%s3418_s3 + $0x118] sm:$0xff]  }
 0x128   :  { %2413 = vmatprep.subr.bf16.mxu1 %v2679_v0 }
 0x129   :  { %2140 = vmatpush3.bf16.msra.mxu0 %v2840_v23 }
 0x12a   :  { %2159 = vmatprep.subr.bf16.mxu0 %v2715_v1 }
 0x12c   :  { %626 = vmatmul.mubr.bf16.vlgmr.msra.gmra.mrb[8].mxu0 %v1878_v28 }
 0x12d   :  { %2160 = vmatpush3.bf16.msra.mxu0 %v2728_v3  ;;  %829 = vmatprep.mubr.bf16.mxu0 %v1909_v38 }
 0x12e   :  { %2161 = vmatprep.subr.bf16.mxu0 %v2734_v4 }
 0x131   :  { %2162 = vmatpush3.bf16.msra.mxu0 %v2747_v6 }
 0x132   :  { %2163 = vmatprep.subr.bf16.mxu0 %v2756_v8 }
 0x135   :  { %2164 = vmatpush3.bf16.msra.mxu0 %v2763_v9 }
 0x136   :  { %2165 = vmatprep.subr.bf16.mxu0 %v2769_v10 }
 0x139   :  { %2166 = vmatpush3.bf16.msra.mxu0 %v2778_v11 }
 0x13a   :  { %2167 = vmatprep.subr.bf16.mxu0 %v2784_v12 }
 0x13d   :  { %2168 = vmatpush3.bf16.msra.mxu0 %v2792_v13 }
 0x13e   :  { %2169 = vmatprep.subr.bf16.mxu0 %v2798_v14 }
 0x141   :  { %2170 = vmatpush3.bf16.msra.mxu0 %v2803_v15 }
 0x142   :  { %2171 = vmatprep.subr.bf16.mxu0 %v2812_v17 }
 0x145   :  { %2172 = vmatpush3.bf16.msra.mxu0 %v2826_v21 }
 0x146   :  { %2173 = vmatprep.subr.bf16.mxu0 %v2832_v22 }
 0x149   :  { %2174 = vmatpush3.bf16.msra.mxu0 %v2840_v23 }
 0x14a   :  { %2193 = vmatprep.subr.bf16.mxu0 %v2715_v1 }
 0x14c   :  { %830 = vmatmul.mubr.bf16.vlgmr.msra.gmra.mrb[12].mxu0 %v1908_v39 }
 0x14d   :  { %2194 = vmatpush3.bf16.msra.mxu0 %v2728_v3  ;;  %1033 = vmatprep.mubr.bf16.mxu0 %v1939_v32  ;;  %v3231_v32 = vld [vmem:[%s3416_s1 + $0x58] sm:$0xff]  }
 0x14e   :  { %2195 = vmatprep.subr.bf16.mxu0 %v2734_v4 }
 0x151   :  { %2196 = vmatpush3.bf16.msra.mxu0 %v2747_v6 }
 0x152   :  { %2197 = vmatprep.subr.bf16.mxu0 %v2756_v8 }
 0x155   :  { %2198 = vmatpush3.bf16.msra.mxu0 %v2763_v9 }
 0x156   :  { %2199 = vmatprep.subr.bf16.mxu0 %v2769_v10 }
 0x159   :  { %2200 = vmatpush3.bf16.msra.mxu0 %v2778_v11 }
 0x15a   :  { %2201 = vmatprep.subr.bf16.mxu0 %v2784_v12 }
 0x15d   :  { %2202 = vmatpush3.bf16.msra.mxu0 %v2792_v13 }
 0x15e   :  { %2203 = vmatprep.subr.bf16.mxu0 %v2798_v14 }
 0x161   :  { %2204 = vmatpush3.bf16.msra.mxu0 %v2803_v15 }
 0x162   :  { %2205 = vmatprep.subr.bf16.mxu0 %v2812_v17 }
 0x165   :  { %2206 = vmatpush3.bf16.msra.mxu0 %v2826_v21 }
 0x166   :  { %2207 = vmatprep.subr.bf16.mxu0 %v2832_v22 }
 0x169   :  { %2208 = vmatpush3.bf16.msra.mxu0 %v2840_v23 }
 0x16a   :  { %2227 = vmatprep.subr.bf16.mxu0 %v2715_v1 }
 0x16c   :  { %1034 = vmatmul.mubr.bf16.vlgmr.msra.gmra.mrb[16].mxu0 %v1938_v33  ;;  %v3237_v33 = vld [vmem:[%s3416_s1 + $0x18] sm:$0xff]  }
 0x16d   :  { %2228 = vmatpush3.bf16.msra.mxu0 %v2728_v3 }
 0x16e   :  { %2229 = vmatprep.subr.bf16.mxu0 %v2734_v4 }
 0x171   :  { %2230 = vmatpush3.bf16.msra.mxu0 %v2747_v6 }
 0x172   :  { %2231 = vmatprep.subr.bf16.mxu0 %v2756_v8 }
 0x175   :  { %2232 = vmatpush3.bf16.msra.mxu0 %v2763_v9 }
 0x176   :  { %2233 = vmatprep.subr.bf16.mxu0 %v2769_v10 }
 0x179   :  { %2234 = vmatpush3.bf16.msra.mxu0 %v2778_v11 }
 0x17a   :  { %2235 = vmatprep.subr.bf16.mxu0 %v2784_v12 }
 0x17d   :  { %2236 = vmatpush3.bf16.msra.mxu0 %v2792_v13 }
 0x17e   :  { %2237 = vmatprep.subr.bf16.mxu0 %v2798_v14 }
 0x181   :  { %2238 = vmatpush3.bf16.msra.mxu0 %v2803_v15 }
 0x182   :  { %2239 = vmatprep.subr.bf16.mxu0 %v2812_v17 }
 0x185   :  { %2240 = vmatpush3.bf16.msra.mxu0 %v2826_v21 }
 0x186   :  { %2241 = vmatprep.subr.bf16.mxu0 %v2832_v22 }
 0x189   :  { %2242 = vmatpush3.bf16.msra.mxu0 %v2840_v23 }
 0x18a   :  { %2477 = vmatprep.subr.bf16.mxu0 %v2679_v0 }
 0x1d5   :  { %v571_v40 = vpop.f32.mrb[12].mxu1 }
 0x1d6   :  { %v2383_v41 = vpop.f32.mrb[13].mxu1 }
 0x1d7   :  { %v574_v42 = vpop.f32.mrb[14].mxu1 }
 0x1d8   :  { %v2384_v43 = vpop.f32.mrb[15].mxu1 }
 0x1dd   :  { %v667_v44 = vpop.f32.mrb[16].mxu1 }
 0x1de   :  { %v2391_v45 = vpop.f32.mrb[17].mxu1 }
 0x1df   :  { %v483_v46 = vpop.f32.mrb[4].mxu0  ;;  %v670_v47 = vpop.f32.mrb[18].mxu1  ;;  %v2627_v45 = vld [vmem:[%s3418_s3 + $0x138] sm:$0xff]  }
 0x1e0   :  { %v3034_v49 = vadd.f32 %v571_v40, %v483_v46  ;;  %v2363_v50 = vpop.f32.mrb[5].mxu0  ;;  %v2392_v51 = vpop.f32.mrb[19].mxu1  ;;  %v2625_v40 = vld [vmem:[%s3418_s3 + $0x128] sm:$0xff]   ;;  %v1966_v46 = vld [vmem:[%s3417_s0 + $0x3c] sm:$0xff] }
 0x1e1   :  { %v486_v52 = vpop.f32.mrb[6].mxu0  ;;  %v1968_v47 = vcombine.low %v1966_v46, %v1966_v46  ;;  %v2634_v50 = vld [vmem:[%s3418_s3 + $0x140] sm:$0xff]   ;;  %v2635_v51 = vld [vmem:[%s3418_s3 + $0x148] sm:$0xff]  }
 0x1e2   :  { %v2364_v53 = vpop.f32.mrb[7].mxu0  ;;  %v2636_v52 = vld [vmem:[%s3418_s3 + $0x150] sm:$0xff]  }
 0x1e3   :  { %v2637_v53 = vld [vmem:[%s3418_s3 + $0x158] sm:$0xff]  }
 0x1ff   :  { %v2141_v54 = vpop.f32.mrb[8].mxu0 }
 0x200   :  { %v2142_v55 = vpop.f32.mrb[9].mxu0 }
 0x201   :  { %v2143_v56 = vadd.f32 %v2142_v55, %v2141_v54  ;;  %v2144_v57 = vpop.f32.mrb[10].mxu0 }
 0x202   :  { %v2145_v58 = vpop.f32.mrb[11].mxu0 }
 0x203   :  { %v628_v1 = vadd.f32 %v2143_v56, %v2932_v48 }
 0x205   :  { %v668_v59 = vadd.f32 %v667_v44, %v628_v1  ;;  %v2626_v44 = vld [vmem:[%s3418_s3 + $0x130] sm:$0xff]  }
 0x207   :  { %v673_v60 = vmax.f32 %v668_v59, 0.0 }
 0x209   :  { %v674_v61 = vpack.c.bf16 %v673_v60, %v673_v60 }
 0x20b   :  { %2410 = vmatmul.mubr.bf16.vlgmr.msra.gmra.mrb[20].mxu1 %v674_v61 }
 0x20c   :  { %2414 = vmatpush3.bf16.msra.mxu1 %v2722_v2  ;;  %2417 = vmatprep.mubr.msk.bf16.mxu1 %vm2680_vm0, %v2679_v0 }
 0x20d   :  { %2415 = vmatprep.subr.bf16.mxu1 %v2679_v0 }
 0x210   :  { %2416 = vmatpush3.bf16.msra.mxu1 %v2741_v5 }
 0x211   :  { %2421 = vmatprep.subr.bf16.mxu1 %v2679_v0 }
 0x213   :  { %2418 = vmatmul.mubr.msk.bf16.vlgmr.msra.gmra.mrb[24].mxu1 %vm184_vm1, %v2608_v62 }
 0x214   :  { %2422 = vmatpush3.bf16.msra.mxu1 %v2609_v63  ;;  %2437 = vmatprep.mubr.msk.bf16.mxu1 %vm2680_vm0, %v2679_v0 }
 0x215   :  { %2423 = vmatprep.subr.bf16.mxu1 %v2679_v0 }
 0x218   :  { %2424 = vmatpush3.bf16.msra.mxu1 %v2610_v7 }
 0x219   :  { %2425 = vmatprep.subr.bf16.mxu1 %v2679_v0 }
 0x21c   :  { %2426 = vmatpush3.bf16.msra.mxu1 %v2611_v16 }
 0x21d   :  { %2427 = vmatprep.subr.bf16.mxu1 %v2679_v0 }
 0x21f   :  { %v2175_v20 = vpop.f32.mrb[12].mxu0 }
 0x220   :  { %2428 = vmatpush3.bf16.msra.mxu1 %v2612_v18  ;;  %v2176_v24 = vpop.f32.mrb[13].mxu0  ;;  %v3176_v18 = vld [vmem:[%s3416_s1 + $0x80] sm:$0xff]  }
 0x221   :  { %2429 = vmatprep.subr.bf16.mxu1 %v2679_v0  ;;  %v2177_v25 = vadd.f32 %v2176_v24, %v2175_v20  ;;  %v2178_v26 = vpop.f32.mrb[14].mxu0  ;;  %v2630_v20 = vld [vmem:[%s3417_s0 + $0x44] ss:$0 sps:$4 sm:$0xff]   ;;  %v3191_v24 = vld [vmem:[%s3416_s1 + $0x88] sm:$0xff]  }
 0x222   :  { %v2179_v28 = vpop.f32.mrb[15].mxu0  ;;  %v2663_v26 = vld [vmem:[%s3416_s1 + $0x40] sm:$0xff]  }
 0x223   :  { %v832_v10 = vadd.f32 %v2177_v25, %v2932_v48  ;;  %v3207_v28 = vld [vmem:[%s3416_s1 + $0x48] sm:$0xff]  }
 0x224   :  { %2430 = vmatpush3.bf16.msra.mxu1 %v2613_v19  ;;  %v1996_v19 = vld [vmem:[%s3417_s0 + $0x48] sm:$0xff] }
 0x225   :  { %2431 = vmatprep.subr.bf16.mxu1 %v2679_v0  ;;  %v1999_v25 = vcombine.high %v1996_v19, %v1996_v19 }
 0x228   :  { %2432 = vmatpush3.bf16.msra.mxu1 %v2614_v27  ;;  %v3201_v27 = vld [vmem:[%s3416_s1] sm:$0xff]  }
 0x229   :  { %2433 = vmatprep.subr.bf16.mxu1 %v2679_v0 }
 0x22c   :  { %2434 = vmatpush3.bf16.msra.mxu1 %v2615_v29  ;;  %v3213_v29 = vld [vmem:[%s3416_s1 + $0x8] sm:$0xff]  }
 0x22d   :  { %2435 = vmatprep.subr.bf16.mxu1 %v2679_v0 }
 0x230   :  { %2436 = vmatpush3.bf16.msra.mxu1 %v2616_v30  ;;  %v3219_v30 = vld [vmem:[%s3416_s1 + $0x50] sm:$0xff]  }
 0x231   :  { %2441 = vmatprep.subr.bf16.mxu1 %v2679_v0 }
 0x23f   :  { %v2209_v38 = vpop.f32.mrb[16].mxu0 }
 0x240   :  { %v2210_v39 = vpop.f32.mrb[17].mxu0 }
 0x241   :  { %v2211_v41 = vadd.f32 %v2210_v39, %v2209_v38  ;;  %v2212_v42 = vpop.f32.mrb[18].mxu0  ;;  %v2646_v38 = vld [vmem:[%s3418_s3 + $0x1a0] sm:$0xff]   ;;  %v2647_v39 = vld [vmem:[%s3418_s3 + $0x1a8] sm:$0xff]  }
 0x242   :  { %v2213_v43 = vpop.f32.mrb[19].mxu0 }
 0x243   :  { %v1036_v1 = vadd.f32 %v2211_v41, %v2932_v48  ;;  %v2649_v41 = vld [vmem:[%s3418_s3 + $0x1b8] sm:$0xff]  }
 0x2de   :  { %v774_v3 = vpop.f32.mrb[20].mxu1 }
 0x2df   :  { %v3101_v4 = vadd.f32 %v774_v3, %v3034_v49  ;;  %v2411_v6 = vpop.f32.mrb[21].mxu1  ;;  %v1969_v49 = vcombine.high %v1966_v46, %v1966_v46  ;;  %v3243_v3 = vld [vmem:[%s3416_s1 + $0x60] sm:$0xff]  }
 0x2e0   :  { %v777_v8 = vpop.f32.mrb[22].mxu1  ;;  %v3255_v6 = vld [vmem:[%s3416_s1 + $0x68] sm:$0xff]  }
 0x2e1   :  { %v2412_v9 = vpop.f32.mrb[23].mxu1  ;;  %1237 = vmatprep.mubr.bf16.mxu0 %v1969_v49  ;;  %v3261_v8 = vld [vmem:[%s3416_s1 + $0x28] sm:$0xff]  }
 0x2e2   :  { %1238 = vmatmul.mubr.bf16.vlgmr.msra.gmra.mrb[20].mxu0 %v1968_v47  ;;  %v3267_v9 = vld [vmem:[%s3416_s1 + $0x70] sm:$0xff]  }
 0x2e3   :  { %2493 = vmatprep.mubr.msk.bf16.mxu0 %vm2680_vm0, %v2679_v0  ;;  %2478 = vmatpush3.bf16.msra.mxu0 %v2634_v50 }
 0x2e4   :  { %2479 = vmatprep.subr.bf16.mxu0 %v2679_v0 }
 0x2e6   :  { %v871_v11 = vpop.f32.mrb[24].mxu1 }
 0x2e7   :  { %v872_v12 = vadd.f32 %v871_v11, %v832_v10  ;;  %v2419_v13 = vpop.f32.mrb[25].mxu1  ;;  %2480 = vmatpush3.bf16.msra.mxu0 %v2635_v51  ;;  %v3273_v10 = vld [vmem:[%s3416_s1 + $0x30] sm:$0xff]   ;;  %v1998_v11 = vcombine.low %v1996_v19, %v1996_v19 }
 0x2e8   :  { %v874_v14 = vpop.f32.mrb[26].mxu1  ;;  %2481 = vmatprep.subr.bf16.mxu0 %v2679_v0 }
 0x2e9   :  { %v877_v15 = vmax.f32 %v872_v12, 0.0  ;;  %v2420_v17 = vpop.f32.mrb[27].mxu1  ;;  %v2633_v12 = vld [vmem:[%s3417_s0 + $0x50] ss:$0 sps:$4 sm:$0xff]  }
 0x2eb   :  { %v878_v21 = vpack.c.bf16 %v877_v15, %v877_v15  ;;  %2482 = vmatpush3.bf16.msra.mxu0 %v2636_v52  ;;  %v2026_v52 = vld [vmem:[%s3417_s0 + $0x54] sm:$0xff] }
 0x2ec   :  { %2483 = vmatprep.subr.bf16.mxu0 %v2679_v0 }
 0x2ed   :  { %2438 = vmatmul.mubr.bf16.vlgmr.msra.gmra.mrb[28].mxu1 %v878_v21  ;;  %v2640_v21 = vld [vmem:[%s3418_s3 + $0x170] sm:$0xff]  }
 0x2ee   :  { %2442 = vmatpush3.bf16.msra.mxu1 %v2722_v2  ;;  %2445 = vmatprep.mubr.msk.bf16.mxu1 %vm2680_vm0, %v2679_v0  ;;  %v2621_v2 = vld [vmem:[%s3418_s3 + $0x108] sm:$0xff]  }
 0x2ef   :  { %2443 = vmatprep.subr.bf16.mxu1 %v2679_v0  ;;  %2484 = vmatpush3.bf16.msra.mxu0 %v2637_v53 }
 0x2f0   :  { %2485 = vmatprep.subr.bf16.mxu0 %v2679_v0 }
 0x2f2   :  { %2444 = vmatpush3.bf16.msra.mxu1 %v2741_v5  ;;  %v2622_v5 = vld [vmem:[%s3418_s3 + $0x110] sm:$0xff]  }
 0x2f3   :  { %2449 = vmatprep.subr.bf16.mxu1 %v2679_v0 }
 0x2f5   :  { %2446 = vmatmul.mubr.msk.bf16.vlgmr.msra.gmra.mrb[32].mxu1 %vm184_vm1, %v2619_v34 }
 0x2f6   :  { %2450 = vmatpush3.bf16.msra.mxu1 %v2620_v35  ;;  %2465 = vmatprep.mubr.msk.bf16.mxu1 %vm2680_vm0, %v2679_v0  ;;  %v2641_v35 = vld [vmem:[%s3418_s3 + $0x178] sm:$0xff]  }
 0x2f7   :  { %2451 = vmatprep.subr.bf16.mxu1 %v2679_v0 }
 0x2fa   :  { %2452 = vmatpush3.bf16.msra.mxu1 %v2621_v2  ;;  %v2642_v2 = vld [vmem:[%s3418_s3 + $0x180] sm:$0xff]  }
 0x2fb   :  { %2453 = vmatprep.subr.bf16.mxu1 %v2679_v0 }
 0x2fe   :  { %2454 = vmatpush3.bf16.msra.mxu1 %v2622_v5  ;;  %v2643_v5 = vld [vmem:[%s3418_s3 + $0x188] sm:$0xff]  }
 0x2ff   :  { %2455 = vmatprep.subr.bf16.mxu1 %v2679_v0 }
 0x302   :  { %2456 = vmatpush3.bf16.msra.mxu1 %v2623_v36  ;;  %v2644_v36 = vld [vmem:[%s3418_s3 + $0x190] sm:$0xff]  }
 0x303   :  { %2457 = vmatprep.subr.bf16.mxu1 %v2679_v0 }
 0x306   :  { %2458 = vmatpush3.bf16.msra.mxu1 %v2624_v37  ;;  %v2645_v37 = vld [vmem:[%s3418_s3 + $0x198] sm:$0xff]  }
 0x307   :  { %2459 = vmatprep.subr.bf16.mxu1 %v2679_v0 }
 0x30a   :  { %2460 = vmatpush3.bf16.msra.mxu1 %v2625_v40  ;;  %v2648_v40 = vld [vmem:[%s3418_s3 + $0x1b0] sm:$0xff]  }
 0x30b   :  { %2461 = vmatprep.subr.bf16.mxu1 %v2679_v0 }
 0x30e   :  { %2462 = vmatpush3.bf16.msra.mxu1 %v2626_v44 }
 0x30f   :  { %2463 = vmatprep.subr.bf16.mxu1 %v2679_v0 }
 0x312   :  { %2464 = vmatpush3.bf16.msra.mxu1 %v2627_v45 }
 0x313   :  { %2469 = vmatprep.subr.bf16.mxu1 %v2679_v0 }
 0x3b5   :  { %v2243_v13 = vpop.f32.mrb[20].mxu0 }
 0x3b6   :  { %v2244_v14 = vpop.f32.mrb[21].mxu0 }
 0x3b7   :  { %v2245_v15 = vadd.f32 %v2244_v14, %v2243_v13  ;;  %v2246_v17 = vpop.f32.mrb[22].mxu0 }
 0x3b8   :  { %v2247_v34 = vpop.f32.mrb[23].mxu0 }
 0x3b9   :  { %v1240_v47 = vadd.f32 %v2245_v15, %v2932_v48 }
 0x3c0   :  { %v978_v54 = vpop.f32.mrb[28].mxu1 }
 0x3c1   :  { %v3170_v55 = vadd.f32 %v978_v54, %v3101_v4  ;;  %v2439_v56 = vpop.f32.mrb[29].mxu1  ;;  %v3249_v4 = vld [vmem:[%s3416_s1 + $0x20] sm:$0xff]  }
 0x3c2   :  { %v981_v57 = vpop.f32.mrb[30].mxu1 }
 0x3c3   :  { %v2440_v58 = vpop.f32.mrb[31].mxu1  ;;  %v2029_v57 = vcombine.high %v2026_v52, %v2026_v52 }
 0x3c8   :  { %v1075_v59 = vpop.f32.mrb[32].mxu1 }
 0x3c9   :  { %v1076_v60 = vadd.f32 %v1075_v59, %v1036_v1  ;;  %v2447_v61 = vpop.f32.mrb[33].mxu1  ;;  %v2677_v59 = vld [vmem:[%s3416_s1 + $0x78] sm:$0xff]  }
 0x3ca   :  { %v1078_v62 = vpop.f32.mrb[34].mxu1 }
 0x3cb   :  { %v1081_v63 = vmax.f32 %v1076_v60, 0.0  ;;  %v2448_v7 = vpop.f32.mrb[35].mxu1 }
 0x3cc   :  { %v2678_v7 = vld [vmem:[%s3416_s1 + $0x38] sm:$0xff]  }
 0x3cd   :  { %v1082_v16 = vpack.c.bf16 %v1081_v63, %v1081_v63  ;;  %v2028_v63 = vcombine.low %v2026_v52, %v2026_v52 }
 0x3cf   :  { %2466 = vmatmul.mubr.bf16.vlgmr.msra.gmra.mrb[36].mxu1 %v1082_v16 }
 0x3d0   :  { %2470 = vmatpush3.bf16.msra.mxu1 %v3176_v18  ;;  %2473 = vmatprep.mubr.msk.bf16.mxu1 %vm2680_vm0, %v2679_v0 }
 0x3d1   :  { %2471 = vmatprep.subr.bf16.mxu1 %v2679_v0 }
 0x3d4   :  { %2472 = vmatpush3.bf16.msra.mxu1 %v3191_v24 }
 0x3d5   :  { %2261 = vmatprep.subr.bf16.mxu1 %v2663_v26 }
 0x3d7   :  { %2474 = vmatmul.mubr.msk.bf16.vlgmr.msra.gmra.mrb[40].mxu1 %vm184_vm1, %v2630_v20 }
 0x3d8   :  { %2262 = vmatpush3.bf16.msra.mxu1 %v3201_v27  ;;  %1441 = vmatprep.mubr.bf16.mxu1 %v1999_v25 }
 0x3d9   :  { %2263 = vmatprep.subr.bf16.mxu1 %v3207_v28 }
 0x3dc   :  { %2264 = vmatpush3.bf16.msra.mxu1 %v3213_v29 }
 0x3dd   :  { %2265 = vmatprep.subr.bf16.mxu1 %v3219_v30 }
 0x3e0   :  { %2266 = vmatpush3.bf16.msra.mxu1 %v3225_v31 }
 0x3e1   :  { %2267 = vmatprep.subr.bf16.mxu1 %v3231_v32 }
 0x3e4   :  { %2268 = vmatpush3.bf16.msra.mxu1 %v3237_v33 }
 0x3e5   :  { %2269 = vmatprep.subr.bf16.mxu1 %v3243_v3 }
 0x3e8   :  { %2270 = vmatpush3.bf16.msra.mxu1 %v3249_v4 }
 0x3e9   :  { %2271 = vmatprep.subr.bf16.mxu1 %v3255_v6 }
 0x3ec   :  { %2272 = vmatpush3.bf16.msra.mxu1 %v3261_v8 }
 0x3ed   :  { %2273 = vmatprep.subr.bf16.mxu1 %v3267_v9 }
 0x3f0   :  { %2274 = vmatpush3.bf16.msra.mxu1 %v3273_v10 }
 0x3f1   :  { %2275 = vmatprep.subr.bf16.mxu1 %v2832_v22  ;;  %v2638_v22 = vld [vmem:[%s3418_s3 + $0x160] sm:$0xff]  }
 0x3f2   :  { %2486 = vmatpush3.bf16.msra.mxu0 %v2638_v22 }
 0x3f3   :  { %2487 = vmatprep.subr.bf16.mxu0 %v2679_v0 }
 0x3f4   :  { %2276 = vmatpush3.bf16.msra.mxu1 %v2840_v23  ;;  %v2639_v23 = vld [vmem:[%s3418_s3 + $0x168] sm:$0xff]  }
 0x3f5   :  { %2497 = vmatprep.subr.bf16.mxu1 %v2679_v0 }
 0x3f6   :  { %2488 = vmatpush3.bf16.msra.mxu0 %v2639_v23 }
 0x3f7   :  { %1442 = vmatmul.mubr.bf16.vlgmr.msra.gmra.mrb[44].mxu1 %v1998_v11  ;;  %2489 = vmatprep.subr.bf16.mxu0 %v2679_v0 }
 0x3f8   :  { %2498 = vmatpush3.bf16.msra.mxu1 %v3176_v18  ;;  %2501 = vmatprep.mubr.msk.bf16.mxu1 %vm2680_vm0, %v2679_v0 }
 0x3f9   :  { %2499 = vmatprep.subr.bf16.mxu1 %v2679_v0 }
 0x3fa   :  { %2490 = vmatpush3.bf16.msra.mxu0 %v2640_v21 }
 0x3fb   :  { %2491 = vmatprep.subr.bf16.mxu0 %v2679_v0 }
 0x3fc   :  { %2500 = vmatpush3.bf16.msra.mxu1 %v3191_v24 }
 0x3fd   :  { %2505 = vmatprep.subr.bf16.mxu1 %v2679_v0 }
 0x3fe   :  { %2492 = vmatpush3.bf16.msra.mxu0 %v2641_v35 }
 0x3ff   :  { %2502 = vmatmul.mubr.msk.bf16.vlgmr.msra.gmra.mrb[48].mxu1 %vm184_vm1, %v2633_v12  ;;  %2295 = vmatprep.subr.bf16.mxu0 %v2663_v26 }
 0x400   :  { %2521 = vmatprep.mubr.msk.bf16.mxu1 %vm2680_vm0, %v2679_v0  ;;  %2506 = vmatpush3.bf16.msra.mxu1 %v2642_v2 }
 0x401   :  { %2507 = vmatprep.subr.bf16.mxu1 %v2679_v0 }
 0x404   :  { %2508 = vmatpush3.bf16.msra.mxu1 %v2643_v5 }
 0x405   :  { %2509 = vmatprep.subr.bf16.mxu1 %v2679_v0 }
 0x408   :  { %2510 = vmatpush3.bf16.msra.mxu1 %v2644_v36 }
 0x409   :  { %2511 = vmatprep.subr.bf16.mxu1 %v2679_v0 }
 0x40c   :  { %2512 = vmatpush3.bf16.msra.mxu1 %v2645_v37 }
 0x40d   :  { %2513 = vmatprep.subr.bf16.mxu1 %v2679_v0 }
 0x410   :  { %2514 = vmatpush3.bf16.msra.mxu1 %v2646_v38 }
 0x411   :  { %2515 = vmatprep.subr.bf16.mxu1 %v2679_v0 }
 0x414   :  { %2516 = vmatpush3.bf16.msra.mxu1 %v2647_v39 }
 0x415   :  { %2517 = vmatprep.subr.bf16.mxu1 %v2679_v0 }
 0x418   :  { %2518 = vmatpush3.bf16.msra.mxu1 %v2648_v40 }
 0x419   :  { %2519 = vmatprep.subr.bf16.mxu1 %v2679_v0 }
 0x41c   :  { %2520 = vmatpush3.bf16.msra.mxu1 %v2649_v41 }
 0x41d   :  { %2525 = vmatprep.subr.bf16.mxu1 %v2679_v0 }
 0x4a2   :  { %v1182_v42 = vpop.f32.mrb[36].mxu1 }
 0x4a3   :  { %v3339_v43 = vadd.f32 %v1182_v42, %v3170_v55  ;;  %v2467_v44 = vpop.f32.mrb[37].mxu1 }
 0x4a4   :  { %v1185_v45 = vpop.f32.mrb[38].mxu1 }
 0x4a5   :  { %v2468_v46 = vpop.f32.mrb[39].mxu1 }
 0x4aa   :  { %v1279_v49 = vpop.f32.mrb[40].mxu1 }
 0x4ab   :  { %v1280_v50 = vadd.f32 %v1279_v49, %v1240_v47  ;;  %v2475_v51 = vpop.f32.mrb[41].mxu1 }
 0x4ac   :  { %v1282_v53 = vpop.f32.mrb[42].mxu1 }
 0x4ad   :  { %v1285_v54 = vmax.f32 %v1280_v50, 0.0  ;;  %v2476_v56 = vpop.f32.mrb[43].mxu1 }
 0x4af   :  { %v1286_v58 = vpack.c.bf16 %v1285_v54, %v1285_v54 }
 0x4b1   :  { %2494 = vmatmul.mubr.bf16.vlgmr.msra.gmra.mrb[24].mxu0 %v1286_v58 }
 0x4b2   :  { %2296 = vmatpush3.bf16.msra.mxu0 %v3201_v27  ;;  %1645 = vmatprep.mubr.bf16.mxu0 %v2029_v57 }
 0x4b3   :  { %2297 = vmatprep.subr.bf16.mxu0 %v3207_v28 }
 0x4b6   :  { %2298 = vmatpush3.bf16.msra.mxu0 %v3213_v29 }
 0x4b7   :  { %2299 = vmatprep.subr.bf16.mxu0 %v3219_v30  ;;  %v2652_v30 = vld [vmem:[%s3417_s0 + $0x5c] ss:$0 sps:$4 sm:$0xff]  }
 0x4ba   :  { %2300 = vmatpush3.bf16.msra.mxu0 %v3225_v31  ;;  %v2653_v31 = vld [vmem:[%s3418_s3 + $0x1c0] sm:$0xff]  }
 0x4bb   :  { %2301 = vmatprep.subr.bf16.mxu0 %v3231_v32  ;;  %v2655_v32 = vld [vmem:[%s3418_s3 + $0x1d0] sm:$0xff]  }
 0x4be   :  { %2302 = vmatpush3.bf16.msra.mxu0 %v3237_v33  ;;  %v2657_v33 = vld [vmem:[%s3418_s3 + $0x1e0] sm:$0xff]  }
 0x4bf   :  { %2303 = vmatprep.subr.bf16.mxu0 %v3243_v3  ;;  %v2658_v3 = vld [vmem:[%s3418_s3 + $0x1e8] sm:$0xff]  }
 0x4c2   :  { %2304 = vmatpush3.bf16.msra.mxu0 %v3249_v4  ;;  %v2659_v4 = vld [vmem:[%s3418_s3 + $0x1f0] sm:$0xff]  }
 0x4c3   :  { %2305 = vmatprep.subr.bf16.mxu0 %v3255_v6  ;;  %v2660_v6 = vld [vmem:[%s3418_s3 + $0x1f8] sm:$0xff]  }
 0x4c6   :  { %2306 = vmatpush3.bf16.msra.mxu0 %v3261_v8 }
 0x4c7   :  { %2307 = vmatprep.subr.bf16.mxu0 %v3267_v9 }
 0x4ca   :  { %v2277_v55 = vpop.f32.mrb[44].mxu1  ;;  %2308 = vmatpush3.bf16.msra.mxu0 %v3273_v10 }
 0x4cb   :  { %v2278_v1 = vpop.f32.mrb[45].mxu1  ;;  %2309 = vmatprep.subr.bf16.mxu0 %v2677_v59 }
 0x4cc   :  { %v2279_v60 = vadd.f32 %v2278_v1, %v2277_v55  ;;  %v2280_v61 = vpop.f32.mrb[46].mxu1 }
 0x4cd   :  { %v2281_v62 = vpop.f32.mrb[47].mxu1 }
 0x4ce   :  { %2310 = vmatpush3.bf16.msra.mxu0 %v2678_v7  ;;  %v1444_v16 = vadd.f32 %v2279_v60, %v2932_v48 }
 0x4cf   :  { %2533 = vmatprep.subr.bf16.mxu0 %v2679_v0 }
 0x4d1   :  { %1646 = vmatmul.mubr.bf16.vlgmr.msra.gmra.mrb[28].mxu0 %v2028_v63 }
 0x4d2   :  { %v1483_v19 = vpop.f32.mrb[48].mxu1  ;;  %2549 = vmatprep.mubr.msk.bf16.mxu0 %vm2680_vm0, %v2679_v0  ;;  %2534 = vmatpush3.bf16.msra.mxu0 %v2653_v31 }
 0x4d3   :  { %v1484_v20 = vadd.f32 %v1483_v19, %v1444_v16  ;;  %v2503_v25 = vpop.f32.mrb[49].mxu1  ;;  %2535 = vmatprep.subr.bf16.mxu0 %v2679_v0 }
 0x4d4   :  { %v1486_v26 = vpop.f32.mrb[50].mxu1 }
 0x4d5   :  { %v1489_v27 = vmax.f32 %v1484_v20, 0.0  ;;  %v2504_v28 = vpop.f32.mrb[51].mxu1 }
 0x4d7   :  { %v1490_v29 = vpack.c.bf16 %v1489_v27, %v1489_v27 }
 0x4d9   :  { %2522 = vmatmul.mubr.bf16.vlgmr.msra.gmra.mrb[52].mxu1 %v1490_v29 }
 0x4da   :  { %2526 = vmatpush3.bf16.msra.mxu1 %v3176_v18  ;;  %2529 = vmatprep.mubr.msk.bf16.mxu1 %vm2680_vm0, %v2679_v0  ;;  %v2654_v18 = vld [vmem:[%s3418_s3 + $0x1c8] sm:$0xff]  }
 0x4db   :  { %2527 = vmatprep.subr.bf16.mxu1 %v2679_v0  ;;  %2536 = vmatpush3.bf16.msra.mxu0 %v2654_v18 }
 0x4dc   :  { %2537 = vmatprep.subr.bf16.mxu0 %v2679_v0 }
 0x4de   :  { %2528 = vmatpush3.bf16.msra.mxu1 %v3191_v24  ;;  %v2656_v24 = vld [vmem:[%s3418_s3 + $0x1d8] sm:$0xff]  }
 0x4df   :  { %2538 = vmatpush3.bf16.msra.mxu0 %v2655_v32 }
 0x4e0   :  { %2539 = vmatprep.subr.bf16.mxu0 %v2679_v0 }
 0x4e1   :  { %2530 = vmatmul.mubr.msk.bf16.vlgmr.msra.gmra.mrb[56].mxu1 %vm184_vm1, %v2652_v30 }
 0x4e3   :  { %2540 = vmatpush3.bf16.msra.mxu0 %v2656_v24 }
 0x4e4   :  { %2541 = vmatprep.subr.bf16.mxu0 %v2679_v0 }
 0x4e7   :  { %2542 = vmatpush3.bf16.msra.mxu0 %v2657_v33 }
 0x4e8   :  { %2543 = vmatprep.subr.bf16.mxu0 %v2679_v0 }
 0x4eb   :  { %2544 = vmatpush3.bf16.msra.mxu0 %v2658_v3 }
 0x4ec   :  { %2545 = vmatprep.subr.bf16.mxu0 %v2679_v0 }
 0x4ef   :  { %2546 = vmatpush3.bf16.msra.mxu0 %v2659_v4 }
 0x4f0   :  { %2547 = vmatprep.subr.bf16.mxu0 %v2679_v0 }
 0x4f3   :  { %2548 = vmatpush3.bf16.msra.mxu0 %v2660_v6 }
 0x584   :  { %v1386_v8 = vpop.f32.mrb[24].mxu0 }
 0x585   :  { %v1392_v9 = vadd.f32 %v1386_v8, %v3339_v43  ;;  %v2495_v10 = vpop.f32.mrb[25].mxu0  ;;  %v2056_v43 = vld [vmem:[%s3420_s4] ss:$0 sm:$0xff] }
 0x586   :  { %v1389_v11 = vpop.f32.mrb[26].mxu0 }
 0x587   :  { %v2496_v12 = vpop.f32.mrb[27].mxu0 }
 0x5a4   :  { %v2311_v22 = vpop.f32.mrb[28].mxu0 }
 0x5a5   :  { %v2312_v23 = vpop.f32.mrb[29].mxu0 }
 0x5a6   :  { %v2313_v13 = vadd.f32 %v2312_v23, %v2311_v22  ;;  %v2314_v14 = vpop.f32.mrb[30].mxu0 }
 0x5a7   :  { %v2315_v15 = vpop.f32.mrb[31].mxu0 }
 0x5a8   :  { %v1648_v2 = vadd.f32 %v2313_v13, %v2932_v48 }
 0x5ac   :  { %v1590_v17 = vpop.f32.mrb[52].mxu1 }
 0x5ad   :  { %v1596_v21 = vadd.f32 %v1590_v17, %v1392_v9  ;;  %v2523_v34 = vpop.f32.mrb[53].mxu1 }
 0x5ae   :  { %v1593_v0 = vpop.f32.mrb[54].mxu1 }
 0x5af   :  { %v2524_v35 = vpop.f32.mrb[55].mxu1 }
 0x5b4   :  { %v1687_v5 = vpop.f32.mrb[56].mxu1 }
 0x5b5   :  { %v1688_v36 = vadd.f32 %v1687_v5, %v1648_v2  ;;  %v2531_v37 = vpop.f32.mrb[57].mxu1 }
 0x5b6   :  { %v1690_v38 = vpop.f32.mrb[58].mxu1 }
 0x5b7   :  { %v1693_v39 = vmax.f32 %v1688_v36, 0.0  ;;  %v2532_v40 = vpop.f32.mrb[59].mxu1 }
 0x5b9   :  { %v1694_v41 = vpack.c.bf16 %v1693_v39, %v1693_v39 }
 0x5bb   :  { %2550 = vmatmul.mubr.bf16.vlgmr.msra.gmra.mrb[32].mxu0 %v1694_v41 }
 0x68e   :  { %v1794_v42 = vpop.f32.mrb[32].mxu0 }
 0x68f   :  { %v1800_v44 = vadd.f32 %v1794_v42, %v1596_v21  ;;  %v2551_v45 = vpop.f32.mrb[33].mxu0 }
 0x690   :  { %v1797_v46 = vpop.f32.mrb[34].mxu0 }
 0x691   :  { %v1808_v47 = vadd.f32 %v2056_v43, %v1800_v44  ;;  %v2552_v49 = vpop.f32.mrb[35].mxu0 }
 0x693   :  { %v1809_v50 = vmax.f32 %v1808_v47, 0.0 }
 0x695   :  { %1810 = vst [vmem:[%s3421_s5] sm:$0xff] %v1809_v50 }

</bundles_post_ra>
